<compile_context>
chip_gen: v7x
topology: tpu7x:2x2x1
jax: 0.10.0
libtpu: 0.0.40
codegen_flags: <defaults>
</compile_context>

<pallas_src>
import jax
import jax.numpy as jnp
from jax.experimental import pallas as pl
from jax.experimental.pallas import tpu as pltpu

NEG_SLOPE = 0.01      # torch.leaky_relu default negative_slope
MASK_VAL = -1e30      # additive mask for non-edges
M_INIT = -1e20        # finite floor for the running row max (keeps exp(MASK_VAL - m) == 0)
LANE = 128


def _round_up(x, m):
    return (x + m - 1) // m * m


def _pick_tile(n):
    """Adaptive tile edge for the O(N^2) stage: amortise per-step overhead on big graphs."""
    if n <= 128:
        return 128
    if n <= 1024:
        return 256
    return 512


# -----------------------------------------------------------------------------
# Stage 1: node projection.   z = h @ W_t ;  [s | d] = z @ [a_src | a_dst]
#   - W_t is the fc weight pre-transposed on the host ([in, out]); no in-kernel .T
#   - the two attention matvecs are fused into a single MXU pass
#   - s is written lane-major ([1, N]) so the O(N^2) stage never transposes
# -----------------------------------------------------------------------------
def project_kernel(h_ref, wt_ref, a2t_ref, z_ref, s_ref, d_ref):
    z = jnp.dot(h_ref[...], wt_ref[...], preferred_element_type=jnp.float32)  # [TM, out_pad] f32
    sd = jnp.dot(z, a2t_ref[...], preferred_element_type=jnp.float32)         # [TM, 2] f32 (fused)
    d_ref[...] = sd[:, 1:2]             # dst term, column layout [TM, 1]
    s_ref[...] = sd[:, 0:1].T           # src term, lane-major [1, TM]; tiny transpose,
                                        # once per row block, off the O(N^2) path
    z_ref[...] = z.astype(z_ref.dtype)  # bf16 for the aggregation matmul


# -----------------------------------------------------------------------------
# Stage 2: tiled masked softmax + aggregation (flash-style online softmax).
#   grid = (dst blocks [parallel], src blocks [arbitrary reduction])
#   The output block (constant index over the src axis) is the f32 accumulator.
# -----------------------------------------------------------------------------
def attend_kernel(s_ref, d_ref, adj_ref, z_ref, out_ref, m_sc, l_sc):
    j = pl.program_id(1)

    @pl.when(j == 0)
    def _():
        m_sc[...] = jnp.full_like(m_sc, M_INIT)
        l_sc[...] = jnp.zeros_like(l_sc)
        out_ref[...] = jnp.zeros_like(out_ref)

    # e[dst, src] = leaky_relu(d[dst] + s[src]); no transposes in this inner loop.
    e = d_ref[...] + s_ref[...]                                    # [TD,1] + [1,TS] -> [TD,TS]
    e = jnp.where(e > 0, e, NEG_SLOPE * e)
    e = jnp.where(adj_ref[...] > 0, e, jnp.float32(MASK_VAL))      # int8 mask compare

    m_prev = m_sc[...]
    m_new = jnp.maximum(m_prev, jnp.max(e, axis=1, keepdims=True))  # always >= M_INIT
    # Masked entries: exp(MASK_VAL - m_new) == 0 because m_new >= M_INIT >> MASK_VAL,
    # so no extra `* adj` multiply is needed and zero-in-degree rows stay exactly 0.
    p = jnp.exp(e - m_new)                                          # [TD, TS] f32
    scale = jnp.exp(m_prev - m_new)                                 # [TD, 1]
    l_sc[...] = scale * l_sc[...] + jnp.sum(p, axis=1, keepdims=True)
    out_ref[...] = scale * out_ref[...] + jnp.dot(
        p.astype(z_ref.dtype), z_ref[...], preferred_element_type=jnp.float32)
    m_sc[...] = m_new

    @pl.when(j == pl.num_programs(1) - 1)
    def _():
        denom = l_sc[...]
        safe = jnp.where(denom > 0, denom, jnp.float32(1.0))   # zero in-degree -> output 0
        inv = pl.reciprocal(safe, approx=True)                 # EUP
        inv = inv * (2.0 - safe * inv)                         # one Newton step -> ~f32 accuracy
        out_ref[...] = out_ref[...] * inv


def gat_layer(h, w_fc, w_attn, adj, *, tile_dst=None, tile_src=None):
    """h: [N, in_dim] f32, w_fc: [out_dim, in_dim], w_attn: [1, 2*out_dim], adj[dst, src]: [N, N]."""
    N, in_dim = h.shape
    out_dim = w_fc.shape[0]

    base = _pick_tile(N)
    tile_dst = tile_dst or base
    tile_src = tile_src or base
    tile_rows = base                                   # stage-1 row-block size
    n_pad = _round_up(N, max(tile_dst, tile_src, tile_rows))
    in_pad = _round_up(in_dim, LANE)
    out_pad = _round_up(out_dim, LANE)                 # lane-dense stores / full MXU output tiles

    # Host-side layout / dtype prep: pre-transposed weights, bf16 MXU inputs, int8 adjacency.
    h_p = jnp.pad(h, ((0, n_pad - N), (0, in_pad - in_dim))).astype(jnp.bfloat16)
    wt_p = jnp.pad(w_fc.T, ((0, in_pad - in_dim), (0, out_pad - out_dim))).astype(jnp.bfloat16)
    a2t = jnp.pad(
        jnp.stack([w_attn[0, :out_dim], w_attn[0, out_dim:]], axis=1),      # [out_dim, 2]
        ((0, out_pad - out_dim), (0, 0))).astype(jnp.float32)
    adj_p = jnp.pad((adj > 0).astype(jnp.int8), ((0, n_pad - N), (0, n_pad - N)))

    vmem_limit = 32 * 1024 * 1024   # explicit; safe on v5e/v6e (128 MiB) and v7x (64 MiB)

    # ---- stage 1: projection --------------------------------------------------
    z_p, s_row, d_col = pl.pallas_call(
        project_kernel,
        out_shape=(
            jax.ShapeDtypeStruct((n_pad, out_pad), jnp.bfloat16),   # z
            jax.ShapeDtypeStruct((1, n_pad), jnp.float32),          # s (lane-major)
            jax.ShapeDtypeStruct((n_pad, 1), jnp.float32),          # d (column)
        ),
        grid=(n_pad // tile_rows,),
        in_specs=[
            pl.BlockSpec((tile_rows, in_pad), lambda i: (i, 0)),
            pl.BlockSpec((in_pad, out_pad), lambda i: (0, 0)),
            pl.BlockSpec((out_pad, 2), lambda i: (0, 0)),
        ],
        out_specs=[
            pl.BlockSpec((tile_rows, out_pad), lambda i: (i, 0)),
            pl.BlockSpec((1, tile_rows), lambda i: (0, i)),
            pl.BlockSpec((tile_rows, 1), lambda i: (i, 0)),
        ],
        compiler_params=pltpu.CompilerParams(
            dimension_semantics=("parallel",), vmem_limit_bytes=vmem_limit),
    )(h_p, wt_p, a2t)

    # ---- stage 2: masked softmax + aggregation --------------------------------
    out_p = pl.pallas_call(
        attend_kernel,
        out_shape=jax.ShapeDtypeStruct((n_pad, out_pad), jnp.float32),
        grid_spec=pltpu.PrefetchScalarGridSpec(
            num_scalar_prefetch=0,
            grid=(n_pad // tile_dst, n_pad // tile_src),
            in_specs=[
                pl.BlockSpec((1, tile_src), lambda i, j: (0, j)),           # s
                pl.BlockSpec((tile_dst, 1), lambda i, j: (i, 0)),           # d
                pl.BlockSpec((tile_dst, tile_src), lambda i, j: (i, j)),    # adj (int8)
                pl.BlockSpec((tile_src, out_pad), lambda i, j: (j, 0)),     # z (bf16)
            ],
            out_specs=pl.BlockSpec((tile_dst, out_pad), lambda i, j: (i, 0)),
            scratch_shapes=[
                pltpu.VMEM((tile_dst, 1), jnp.float32),         # running row max
                pltpu.VMEM((tile_dst, 1), jnp.float32),         # running denominator
            ],
        ),
        compiler_params=pltpu.CompilerParams(
            dimension_semantics=("parallel", "arbitrary"),
            vmem_limit_bytes=vmem_limit),
    )(s_row, d_col, adj_p, z_p)

    return out_p[:N, :out_dim]


def gat_layer_ref(h, w_fc, w_attn, adj):
    """Pure-JAX reference mirroring the kernel's bf16 matmul inputs / f32 accumulation."""
    out_dim = w_fc.shape[0]
    z = jnp.dot(h.astype(jnp.bfloat16), w_fc.T.astype(jnp.bfloat16),
                preferred_element_type=jnp.float32)
    s = z @ w_attn[:, :out_dim].T          # [N, 1]
    d = z @ w_attn[:, out_dim:].T          # [N, 1]
    e = d + s.T
    e = jnp.where(e > 0, e, NEG_SLOPE * e)
    e = jnp.where(adj > 0, e, -1e30)
    m = jnp.max(e, axis=1, keepdims=True)
    p = jnp.where(adj > 0, jnp.exp(e - m), 0.0)
    denom = jnp.sum(p, axis=1, keepdims=True)
    alpha = p / jnp.where(denom > 0, denom, 1.0)
    z_bf = z.astype(jnp.bfloat16).astype(jnp.float32)
    return jnp.dot(alpha, z_bf, precision=jax.lax.Precision.HIGHEST)


if __name__ == "__main__":
    key = jax.random.PRNGKey(0)

    def check(N, in_dim, out_dim, kk):
        k_h, k_w, k_a, k_g = jax.random.split(kk, 4)
        h = jax.random.normal(k_h, (N, in_dim), dtype=jnp.float32)
        # nn.Linear(in_dim, out_dim, bias=False) and nn.Linear(2*out_dim, 1, bias=False)
        w_fc = jax.random.normal(k_w, (out_dim, in_dim), dtype=jnp.float32) * 0.1
        w_attn = jax.random.normal(k_a, (1, 2 * out_dim), dtype=jnp.float32) * 0.1
        # deterministic random graph as dense adj[dst, src]; self-loops added
        adj = (jax.random.uniform(k_g, (N, N)) < 0.3).astype(jnp.float32)
        adj = jnp.maximum(adj, jnp.eye(N, dtype=jnp.float32))

        out = jax.block_until_ready(gat_layer(h, w_fc, w_attn, adj))
        ref = gat_layer_ref(h, w_fc, w_attn, adj)
        assert out.shape == (N, out_dim)
        # bf16 MXU inputs (with f32 accumulation) give ~1e-3-scale differences vs the reference.
        assert jnp.allclose(out, ref, atol=1e-2, rtol=1e-2), (
            f"mismatch vs JAX reference (N={N}): "
            f"max abs diff {float(jnp.max(jnp.abs(out - ref)))}")

    k1, k2, k3 = jax.random.split(key, 3)
    check(16, 16, 8, k1)       # small shapes implied by the module (single 128 tile)
    check(200, 40, 24, k2)     # ragged case -> exercises padding (256 tiles, 1x1 grid)
    check(700, 40, 24, k3)     # multi-block case -> 256 tiles, (3, 3) grid, online softmax
    # TODO(synk): DGL CoraGraphDataset loading is not reproduced; a dense adjacency mask
    # built in-script stands in for the graph object.
    print("KERNEL_OK")
</pallas_src>

<mosaic_0001>
module attributes {stable_mosaic.version = 11 : i64} {
  func.func @project_kernel(%arg0: i32, %arg1: memref<128x128xbf16, #tpu.memory_space<vmem>>, %arg2: memref<128x128xbf16, #tpu.memory_space<vmem>>, %arg3: memref<128x2xf32, #tpu.memory_space<vmem>>, %arg4: memref<128x128xbf16, #tpu.memory_space<vmem>>, %arg5: memref<1x128xf32, #tpu.memory_space<vmem>>, %arg6: memref<128x1xf32, #tpu.memory_space<vmem>>) attributes {dimension_semantics = [#tpu.dimension_semantics<parallel>], iteration_bounds = array<i64: 1>, scalar_prefetch = 0 : i64, scratch_operands = 0 : i64, tpu.core_type = #tpu.core_type<tc>, window_params = [{transform_indices = @transform_0, window_bounds = array<i64: 128, 128>}, {pipeline_mode = #tpu.pipeline_mode<synchronous>, transform_indices = @transform_1, window_bounds = array<i64: 128, 128>}, {pipeline_mode = #tpu.pipeline_mode<synchronous>, transform_indices = @transform_2, window_bounds = array<i64: 128, 2>}, {transform_indices = @transform_3, window_bounds = array<i64: 128, 128>}, {transform_indices = @transform_4, window_bounds = array<i64: 1, 128>}, {transform_indices = @transform_5, window_bounds = array<i64: 128, 1>}]} {
    %c0 = arith.constant 0 : index
    %c0_0 = arith.constant 0 : index
    %0 = vector.load %arg1[%c0, %c0_0] : memref<128x128xbf16, #tpu.memory_space<vmem>>, vector<128x128xbf16>
    %c0_1 = arith.constant 0 : index
    %c0_2 = arith.constant 0 : index
    %1 = vector.load %arg2[%c0_1, %c0_2] : memref<128x128xbf16, #tpu.memory_space<vmem>>, vector<128x128xbf16>
    %cst = arith.constant dense<0.000000e+00> : vector<128x128xf32>
    %2 = tpu.matmul %0, %1, %cst {dimension_numbers = #tpu.dot_dimension_numbers<[1], [0], [0], [1], [0, 0, 1, 1], [], []>} : vector<128x128xbf16>, vector<128x128xbf16>, vector<128x128xf32> -> vector<128x128xf32>
    %c0_3 = arith.constant 0 : index
    %c0_4 = arith.constant 0 : index
    %3 = vector.load %arg3[%c0_3, %c0_4] : memref<128x2xf32, #tpu.memory_space<vmem>>, vector<128x2xf32>
    %cst_5 = arith.constant dense<0.000000e+00> : vector<128x2xf32>
    %4 = tpu.matmul %2, %3, %cst_5 {dimension_numbers = #tpu.dot_dimension_numbers<[1], [0], [0], [1], [0, 0, 1, 1], [], []>} : vector<128x128xf32>, vector<128x2xf32>, vector<128x2xf32> -> vector<128x2xf32>
    %5 = vector.extract_strided_slice %4 {offsets = [0, 1], sizes = [128, 1], strides = [1, 1]} : vector<128x2xf32> to vector<128x1xf32>
    %c0_6 = arith.constant 0 : index
    %c0_7 = arith.constant 0 : index
    %6 = vector.load %arg6[%c0_6, %c0_7] : memref<128x1xf32, #tpu.memory_space<vmem>>, vector<128x1xf32>
    tpu.vector_store %arg6[%c0_6, %c0_7], %5 {strides = array<i32>} : memref<128x1xf32, #tpu.memory_space<vmem>>, vector<128x1xf32>,
    %7 = vector.extract_strided_slice %4 {offsets = [0, 0], sizes = [128, 1], strides = [1, 1]} : vector<128x2xf32> to vector<128x1xf32>
    %8 = tpu.transpose %7, [1, 0] : vector<128x1xf32> -> vector<1x128xf32>
    %c0_8 = arith.constant 0 : index
    %c0_9 = arith.constant 0 : index
    %9 = vector.load %arg5[%c0_8, %c0_9] : memref<1x128xf32, #tpu.memory_space<vmem>>, vector<1x128xf32>
    tpu.vector_store %arg5[%c0_8, %c0_9], %8 {strides = array<i32>} : memref<1x128xf32, #tpu.memory_space<vmem>>, vector<1x128xf32>,
    %10 = arith.truncf %2 : vector<128x128xf32> to vector<128x128xbf16>
    %c0_10 = arith.constant 0 : index
    %c0_11 = arith.constant 0 : index
    %11 = vector.load %arg4[%c0_10, %c0_11] : memref<128x128xbf16, #tpu.memory_space<vmem>>, vector<128x128xbf16>
    tpu.vector_store %arg4[%c0_10, %c0_11], %10 {strides = array<i32>} : memref<128x128xbf16, #tpu.memory_space<vmem>>, vector<128x128xbf16>,
    return
  }
  func.func @transform_0(%arg0: i32) -> (i32, i32) {
    %c0_i32 = arith.constant 0 : i32
    %c0_i32_0 = arith.constant 0 : i32
    return %arg0, %c0_i32 : i32, i32
  }
  func.func @transform_1(%arg0: i32) -> (i32, i32) {
    %c0_i32 = arith.constant 0 : i32
    %c0_i32_0 = arith.constant 0 : i32
    %c0_i32_1 = arith.constant 0 : i32
    return %c0_i32, %c0_i32_0 : i32, i32
  }
  func.func @transform_2(%arg0: i32) -> (i32, i32) {
    %c0_i32 = arith.constant 0 : i32
    %c0_i32_0 = arith.constant 0 : i32
    %c0_i32_1 = arith.constant 0 : i32
    return %c0_i32, %c0_i32_0 : i32, i32
  }
  func.func @transform_3(%arg0: i32) -> (i32, i32) {
    %c0_i32 = arith.constant 0 : i32
    %c0_i32_0 = arith.constant 0 : i32
    return %arg0, %c0_i32 : i32, i32
  }
  func.func @transform_4(%arg0: i32) -> (i32, i32) {
    %c0_i32 = arith.constant 0 : i32
    %c0_i32_0 = arith.constant 0 : i32
    return %c0_i32, %arg0 : i32, i32
  }
  func.func @transform_5(%arg0: i32) -> (i32, i32) {
    %c0_i32 = arith.constant 0 : i32
    %c0_i32_0 = arith.constant 0 : i32
    return %arg0, %c0_i32 : i32, i32
  }
}

</mosaic_0001>

<bundles_post_ra>
// kernel: tpu_custom_call.1
= control target key start
LH: loop header
LB: loop body
LE: loop exit
PB: predicated region body
PF: predicated region fallthrough
CT: control target
= control target key end

     0   :  { %11 = vsyncpa [#allocation3], 0  ;;  %s1201_s0 = inlined_call_operand.vmem [shape: bf16[128,128], index: 0, kind: input, shape index: {}]   ;;  %s1202_s1 = inlined_call_operand.vmem [shape: bf16[128,128], index: 1, kind: input, shape index: {}]   ;;  %s1203_s2 = inlined_call_operand.vmem [shape: f32[128,2], index: 2, kind: input, shape index: {}]   ;;  %s1204_s3 = inlined_call_operand.hbm [shape: bf16[128,128], index: 3, kind: output, shape index: {0}]   ;;  %s1205_s4 = inlined_call_operand.hbm [shape: f32[1,128], index: 4, kind: output, shape index: {1}]   ;;  %s1206_s5 = inlined_call_operand.vmem [shape: f32[128,1], index: 5, kind: output, shape index: {2}]  }
   0x1   :  { %v902_v0 = vld [vmem:[%s1202_s1] sm:$0xff]   ;;  %v903_v1 = vld [vmem:[%s1202_s1 + $0x8] sm:$0xff]   ;;  %v904_v2 = vld [vmem:[%s1202_s1 + $0x10] sm:$0xff]  }
   0x2   :  { %777 = vmatprep.subr.bf16.mxu0 %v902_v0  ;;  %v905_v3 = vld [vmem:[%s1202_s1 + $0x18] sm:$0xff]   ;;  %v910_v4 = vld [vmem:[%s1201_s0] sm:$0xff]   ;;  %v907_v6 = vld [vmem:[%s1202_s1 + $0x28] sm:$0xff]  }
   0x3   :  { %778 = vmatpush3.bf16.msra.mxu0 %v902_v0  ;;  %793 = vmatprep.mubr.bf16.mxu0 %v910_v4  ;;  %v906_v5 = vld [vmem:[%s1202_s1 + $0x20] sm:$0xff]   ;;  %v246_v8 = vld [vmem:[%s1203_s2 + $0x8] sm:$0xff]  ;;  %v247_v9 = vld [vmem:[%s1203_s2 + $0x10] sm:$0xff] }
   0x4   :  { %779 = vmatprep.subr.bf16.mxu0 %v903_v1  ;;  %v245_v7 = vld [vmem:[%s1203_s2] sm:$0xff]  ;;  %v248_v11 = vld [vmem:[%s1203_s2 + $0x18] sm:$0xff]  ;;  %v250_v14 = vld [vmem:[%s1203_s2 + $0x28] sm:$0xff] }
   0x5   :  { %v865_v10 = vpack.c.bf16 %v246_v8, %v245_v7  ;;  %v869_v12 = vpack.c.bf16 %v248_v11, %v247_v9  ;;  %v249_v13 = vld [vmem:[%s1203_s2 + $0x20] sm:$0xff]  ;;  %v908_v15 = vld [vmem:[%s1202_s1 + $0x30] sm:$0xff]  }
   0x7   :  { %780 = vmatpush3.bf16.msra.mxu0 %v903_v1  ;;  %866 = vmatprep.subr.bf16.mxu1 %v865_v10 }
   0x8   :  { %781 = vmatprep.subr.bf16.mxu0 %v904_v2  ;;  %868 = vmatpush3.bf16.msra.mxu1 %v865_v10 }
   0xb   :  { %782 = vmatpush3.bf16.msra.mxu0 %v904_v2 }
   0xc   :  { %783 = vmatprep.subr.bf16.mxu0 %v905_v3 }
   0xf   :  { %784 = vmatpush3.bf16.msra.mxu0 %v905_v3 }
  0x10   :  { %785 = vmatprep.subr.bf16.mxu0 %v906_v5 }
  0x13   :  { %786 = vmatpush3.bf16.msra.mxu0 %v906_v5 }
  0x14   :  { %787 = vmatprep.subr.bf16.mxu0 %v907_v6 }
  0x15   :  { %12 = vsyncpa [#allocation5], 0  ;;  %870 = vmatprep.subr.bf16.mxu1 %v869_v12  ;;  %v873_v16 = vpack.c.bf16 %v250_v14, %v249_v13  ;;  %v251_v17 = vld [vmem:[%s1203_s2 + $0x30] sm:$0xff]  ;;  %v252_v18 = vld [vmem:[%s1203_s2 + $0x38] sm:$0xff] }
  0x16   :  { %v909_v19 = vld [vmem:[%s1202_s1 + $0x38] sm:$0xff]   ;;  %872 = vmatpush3.bf16.msra.mxu1 %v869_v12  ;;  %v877_v20 = vpack.c.bf16 %v252_v18, %v251_v17  ;;  %v253_v21 = vld [vmem:[%s1203_s2 + $0x40] sm:$0xff]  ;;  %v254_v22 = vld [vmem:[%s1203_s2 + $0x48] sm:$0xff] }
  0x17   :  { %788 = vmatpush3.bf16.msra.mxu0 %v907_v6  ;;  %874 = vmatprep.subr.bf16.mxu1 %v873_v16  ;;  %v881_v23 = vpack.c.bf16 %v254_v22, %v253_v21  ;;  %v911_v24 = vld [vmem:[%s1201_s0 + $0x8] sm:$0xff]   ;;  %v255_v25 = vld [vmem:[%s1203_s2 + $0x50] sm:$0xff]  ;;  %v256_v26 = vld [vmem:[%s1203_s2 + $0x58] sm:$0xff] }
  0x18   :  { %789 = vmatprep.subr.bf16.mxu0 %v908_v15  ;;  %v912_v27 = vld [vmem:[%s1201_s0 + $0x10] sm:$0xff]   ;;  %v885_v28 = vpack.c.bf16 %v256_v26, %v255_v25  ;;  %v257_v29 = vld [vmem:[%s1203_s2 + $0x60] sm:$0xff]  ;;  %v258_v30 = vld [vmem:[%s1203_s2 + $0x68] sm:$0xff] }
  0x19   :  { %v889_v31 = vpack.c.bf16 %v258_v30, %v257_v29  ;;  %v913_v32 = vld [vmem:[%s1201_s0 + $0x18] sm:$0xff]   ;;  %v914_v33 = vld [vmem:[%s1201_s0 + $0x20] sm:$0xff]   ;;  %v915_v34 = vld [vmem:[%s1201_s0 + $0x28] sm:$0xff]  }
  0x1a   :  { %876 = vmatpush3.bf16.msra.mxu1 %v873_v16  ;;  %v916_v35 = vld [vmem:[%s1201_s0 + $0x30] sm:$0xff]   ;;  %v917_v36 = vld [vmem:[%s1201_s0 + $0x38] sm:$0xff]   ;;  %s966_s0 = smov 127  }
  0x1b   :  { %790 = vmatpush3.bf16.msra.mxu0 %v908_v15  ;;  %878 = vmatprep.subr.bf16.mxu1 %v877_v20  ;;  %v259_v37 = vld [vmem:[%s1203_s2 + $0x70] sm:$0xff]  ;;  %v260_v38 = vld [vmem:[%s1203_s2 + $0x78] sm:$0xff]  ;;  %s967_s2 = smov [#allocation2]  }
  0x1c   :  { %791 = vmatprep.subr.bf16.mxu0 %v909_v19  ;;  %v893_v39 = vpack.c.bf16 %v260_v38, %v259_v37  ;;  %s605_s6 = sshll.u32 %s967_s2, 4  ;;  %s606_s6 = int_to_ptr.vmem [resolvable:$true] %s605_s6 }
  0x1d   :  { %s918_s7 = scalar_lea.vmem %s606_s6, 1024  ;;  %p923_p1 = scmp.lt.s32.totalorder %s606_s6, %s606_s6 }
  0x1e   :  { %880 = vmatpush3.bf16.msra.mxu1 %v877_v20  ;;  %p919_p0 = scmp.ne.s32.totalorder %s606_s6, %s918_s7  ;;  %p924_p2 = scmp.lt.s32.totalorder %s918_s7, %s918_s7 }
  0x1f   :  { %792 = vmatpush3.bf16.msra.mxu0 %v909_v19  ;;  %882 = vmatprep.subr.bf16.mxu1 %v881_v23 }
  0x20   :  { %p925_p3 = por %p924_p2, %p923_p1 }
  0x22   :  { %794 = vmatmul.mubr.bf16.vlgmr.msra.gmra.mrb[0].mxu0 %v911_v24  ;;  %884 = vmatpush3.bf16.msra.mxu1 %v881_v23  ;;  %p926_p4 = pnand %p925_p3, %p919_p0 }
  0x23   :  { %797 = vmatprep.mubr.bf16.mxu0 %v912_v27  ;;  %886 = vmatprep.subr.bf16.mxu1 %v885_v28 }
  0x26   :  { %888 = vmatpush3.bf16.msra.mxu1 %v885_v28 }
  0x27   :  { %890 = vmatprep.subr.bf16.mxu1 %v889_v31 }
  0x2a   :  { %798 = vmatmul.mubr.bf16.gmra.mrb[4].mxu0 %v913_v32  ;;  %892 = vmatpush3.bf16.msra.mxu1 %v889_v31 }
  0x2b   :  { %801 = vmatprep.mubr.bf16.mxu0 %v914_v33  ;;  %894 = vmatprep.subr.bf16.mxu1 %v893_v39 }
  0x2e   :  { %896 = vmatpush3.bf16.msra.mxu1 %v893_v39 }
  0x32   :  { %802 = vmatmul.mubr.bf16.gmra.mrb[8].mxu0 %v915_v34 }
  0x33   :  { %805 = vmatprep.mubr.bf16.mxu0 %v916_v35 }
  0x3a   :  { %806 = vmatmul.mubr.bf16.gmra.mrb[12].mxu0 %v917_v36 }
  0xf5   :  { %v795_v40 = vpop.f32.mrb[0].mxu0 }
  0xf6   :  { %v182_v41 = vpop.f32.mrb[1].mxu0 }
  0xf7   :  { %v796_v42 = vpop.f32.mrb[2].mxu0  ;;  %841 = vmatprep.mubr.f32.mxu1 %v182_v41 }
  0xf8   :  { %v690_v43 = vpack.c.bf16 %v796_v42, %v795_v40  ;;  %v185_v44 = vpop.f32.mrb[3].mxu0 }
  0xf9   :  { %v685_v45 = vpack.c.bf16 %v185_v44, %v182_v41  ;;  %842 = vmatmul.mubr.f32.vlgmr.msra.gmra.mrb[0].mxu1 %v185_v44 }
  0xfa   :  { %722 = vst [vmem:[#allocation2 + $0x8] sm:$0xff] %v690_v43   ;;  %844 = vmatprep.mubr.f32.mxu1 %v795_v40 }
  0xfb   :  { %686 = vst [vmem:[#allocation2] sm:$0xff] %v685_v45  }
  0xfd   :  { %v799_v46 = vpop.f32.mrb[4].mxu0  ;;  %845 = vmatmul.mubr.f32.gmra.mrb[2].mxu1 %v796_v42 }
  0xfe   :  { %v198_v47 = vpop.f32.mrb[5].mxu0 }
  0xff   :  { %v800_v48 = vpop.f32.mrb[6].mxu0  ;;  %847 = vmatprep.mubr.f32.mxu1 %v198_v47 }
 0x100   :  { %v700_v49 = vpack.c.bf16 %v800_v48, %v799_v46  ;;  %v201_v50 = vpop.f32.mrb[7].mxu0 }
 0x101   :  { %v695_v51 = vpack.c.bf16 %v201_v50, %v198_v47  ;;  %848 = vmatmul.mubr.f32.gmra.mrb[4].mxu1 %v201_v50 }
 0x102   :  { %724 = vst [vmem:[#allocation2 + $0x18] sm:$0xff] %v700_v49   ;;  %850 = vmatprep.mubr.f32.mxu1 %v799_v46 }
 0x103   :  { %723 = vst [vmem:[#allocation2 + $0x10] sm:$0xff] %v695_v51  }
 0x105   :  { %v803_v52 = vpop.f32.mrb[8].mxu0  ;;  %851 = vmatmul.mubr.f32.gmra.mrb[6].mxu1 %v800_v48 }
 0x106   :  { %v214_v53 = vpop.f32.mrb[9].mxu0 }
 0x107   :  { %v804_v54 = vpop.f32.mrb[10].mxu0  ;;  %853 = vmatprep.mubr.f32.mxu1 %v214_v53 }
 0x108   :  { %v710_v55 = vpack.c.bf16 %v804_v54, %v803_v52  ;;  %v217_v56 = vpop.f32.mrb[11].mxu0 }
 0x109   :  { %v705_v57 = vpack.c.bf16 %v217_v56, %v214_v53  ;;  %854 = vmatmul.mubr.f32.gmra.mrb[8].mxu1 %v217_v56 }
 0x10a   :  { %726 = vst [vmem:[#allocation2 + $0x28] sm:$0xff] %v710_v55   ;;  %856 = vmatprep.mubr.f32.mxu1 %v803_v52 }
 0x10b   :  { %725 = vst [vmem:[#allocation2 + $0x20] sm:$0xff] %v705_v57  }
 0x10d   :  { %v807_v58 = vpop.f32.mrb[12].mxu0  ;;  %857 = vmatmul.mubr.f32.gmra.mrb[10].mxu1 %v804_v54 }
 0x10e   :  { %v230_v59 = vpop.f32.mrb[13].mxu0 }
 0x10f   :  { %v808_v60 = vpop.f32.mrb[14].mxu0  ;;  %859 = vmatprep.mubr.f32.mxu1 %v230_v59 }
 0x110   :  { %v720_v61 = vpack.c.bf16 %v808_v60, %v807_v58  ;;  %v233_v62 = vpop.f32.mrb[15].mxu0 }
 0x111   :  { %v715_v63 = vpack.c.bf16 %v233_v62, %v230_v59  ;;  %860 = vmatmul.mubr.f32.gmra.mrb[12].mxu1 %v233_v62 }
 0x112   :  { %728 = vst [vmem:[#allocation2 + $0x38] sm:$0xff] %v720_v61   ;;  %862 = vmatprep.mubr.f32.mxu1 %v807_v58 }
 0x113   :  { %727 = vst [vmem:[#allocation2 + $0x30] sm:$0xff] %v715_v63  }
 0x115   :  { %863 = vmatmul.mubr.f32.gmra.mrb[14].mxu1 %v808_v60 }
 0x1cc   :  { %v843_v0 = vpop.f32.mrb[0].mxu1 }
 0x1cd   :  { %424 = vrot.lane.b32.xlu0 %v843_v0, %s966_s0  ;;  %v327_v1 = vpop.f32.mrb[1].mxu1 }
 0x1d0   :  { %v846_v2 = vpop.f32.mrb[2].mxu1 }
 0x1d1   :  { %422 = vrot.lane.b32.xlu0 %v327_v1, %s966_s0  ;;  %428 = vrot.lane.b32.xlu1 %v846_v2, %s966_s0  ;;  %v337_v3 = vpop.f32.mrb[3].mxu1 }
 0x1d4   :  { %v849_v4 = vpop.f32.mrb[4].mxu1 }
 0x1d5   :  { %426 = vrot.lane.b32.xlu1 %v337_v3, %s966_s0  ;;  %v347_v5 = vpop.f32.mrb[5].mxu1 }
 0x1d6   :  { %430 = vrot.lane.b32.xlu0 %v347_v5, %s966_s0 }
 0x1d8   :  { %v852_v6 = vpop.f32.mrb[6].mxu1 }
 0x1d9   :  { %432 = vrot.lane.b32.xlu1 %v849_v4, %s966_s0  ;;  %v357_v7 = vpop.f32.mrb[7].mxu1 }
 0x1da   :  { %434 = vrot.lane.b32.xlu0 %v357_v7, %s966_s0 }
 0x1dc   :  { %v855_v8 = vpop.f32.mrb[8].mxu1 }
 0x1dd   :  { %436 = vrot.lane.b32.xlu1 %v852_v6, %s966_s0  ;;  %v367_v9 = vpop.f32.mrb[9].mxu1 }
 0x1de   :  { %438 = vrot.lane.b32.xlu0 %v367_v9, %s966_s0 }
 0x1e0   :  { %v858_v10 = vpop.f32.mrb[10].mxu1 }
 0x1e1   :  { %440 = vrot.lane.b32.xlu1 %v855_v8, %s966_s0  ;;  %v377_v11 = vpop.f32.mrb[11].mxu1 }
 0x1e2   :  { %442 = vrot.lane.b32.xlu0 %v377_v11, %s966_s0 }
 0x1e4   :  { %v861_v12 = vpop.f32.mrb[12].mxu1 }
 0x1e5   :  { %444 = vrot.lane.b32.xlu1 %v858_v10, %s966_s0  ;;  %v387_v13 = vpop.f32.mrb[13].mxu1 }
 0x1e6   :  { %446 = vrot.lane.b32.xlu0 %v387_v13, %s966_s0 }
 0x1e8   :  { %v864_v14 = vpop.f32.mrb[14].mxu1 }
 0x1e9   :  { %448 = vrot.lane.b32.xlu1 %v861_v12, %s966_s0  ;;  %v397_v15 = vpop.f32.mrb[15].mxu1 }
 0x1ea   :  { %450 = vrot.lane.b32.xlu0 %v397_v15, %s966_s0 }
 0x1ed   :  { %452 = vrot.lane.b32.xlu1 %v864_v14, %s966_s0 }
 0x208   :  { %487 = vxpose.xlu0.b32.start [1/16] (narrow) %v327_v1, 8 }
 0x209   :  { %929 = shalt.err (!%p926_p4)
}
 0x20a   :  { %s930_s9 = scalar_lea.hbm %s1204_s3, 1024 }
 0x20b   :  { %p931_p5 = scmp.ne.s32.totalorder %s1204_s3, %s930_s9  ;;  %p934_p6 = scmp.lt.u32.totalorder %s930_s9, %s1204_s3 }
 0x20d   :  { %p936_p7 = pnand %p934_p6, %p931_p5 }
 0x20f   :  { %939 = shalt.err (!%p936_p7)
}
 0x210   :  { %s968_s14 = smov 64   ;;  %s969_s15 = smov 4   ;;  %488 = vxpose.xlu0.b32.cont [2/16] (narrow) %v843_v0, 8  ;;  %vm470_vm0 = vcmask 7168  }
 0x211   :  { %611 = dma.vmem_to_hbm [thread:$0]  %s606_s6, 1024, %s1204_s3, [#allocation3], %s968_s14, %s968_s14, %s969_s15  }
 0x212   :  { %s970_s20 = smov [#allocation4]  }
 0x213   :  { %s618_s21 = sshll.u32 %s970_s20, 4  ;;  %s619_s21 = int_to_ptr.vmem [resolvable:$true] %s618_s21 }
 0x214   :  { %489 = vxpose.xlu0.b32.cont [3/16] (narrow) %v337_v3, 8  ;;  %s940_s22 = scalar_lea.vmem %s619_s21, 16  ;;  %s944_s23 = scalar_lea.vmem %s619_s21, 32 }
 0x215   :  { %p941_p8 = scmp.ne.s32.totalorder %s619_s21, %s940_s22  ;;  %p945_p9 = scmp.lt.s32.totalorder %s619_s21, %s619_s21 }
 0x216   :  { %p946_p10 = scmp.lt.s32.totalorder %s944_s23, %s940_s22 }
 0x218   :  { %490 = vxpose.xlu0.b32.cont [4/16] (narrow) %v846_v2, 8  ;;  %p947_p11 = por %p946_p10, %p945_p9 }
 0x21a   :  { %p948_p12 = pnand %p947_p11, %p941_p8 }
 0x21c   :  { %491 = vxpose.xlu0.b32.cont [5/16] (narrow) %v347_v5, 8 }
 0x220   :  { %492 = vxpose.xlu0.b32.cont [6/16] (narrow) %v849_v4, 8 }
 0x224   :  { %493 = vxpose.xlu0.b32.cont [7/16] (narrow) %v357_v7, 8 }
 0x228   :  { %494 = vxpose.xlu0.b32.cont [8/16] (narrow) %v852_v6, 8 }
 0x22c   :  { %495 = vxpose.xlu0.b32.cont [9/16] (narrow) %v367_v9, 8 }
 0x230   :  { %496 = vxpose.xlu0.b32.cont [10/16] (narrow) %v855_v8, 8 }
 0x234   :  { %497 = vxpose.xlu0.b32.cont [11/16] (narrow) %v377_v11, 8 }
 0x238   :  { %498 = vxpose.xlu0.b32.cont [12/16] (narrow) %v858_v10, 8 }
 0x23c   :  { %499 = vxpose.xlu0.b32.cont [13/16] (narrow) %v387_v13, 8 }
 0x23f   :  { %v425_v16 = vpop.permute.xlu0 %424 }
 0x240   :  { %500 = vxpose.xlu0.b32.cont [14/16] (narrow) %v861_v12, 8  ;;  %472 = vst.msk [vmem:[%s1206_s5 + $0x8] sm:$0xff] %vm470_vm0, %v425_v16 }
 0x243   :  { %v423_v17 = vpop.permute.xlu0 %422  ;;  %v429_v18 = vpop.permute.xlu1 %428 }
 0x244   :  { %501 = vxpose.xlu0.b32.cont [15/16] (narrow) %v397_v15, 8  ;;  %471 = vst.msk [vmem:[%s1206_s5] sm:$0xff] %vm470_vm0, %v423_v17  ;;  %474 = vst.msk [vmem:[%s1206_s5 + $0x18] sm:$0xff] %vm470_vm0, %v429_v18 }
 0x247   :  { %v427_v19 = vpop.permute.xlu1 %426 }
 0x248   :  { %502 = vxpose.xlu0.b32.end [16/16] (narrow) %v864_v14, 8  ;;  %473 = vst.msk [vmem:[%s1206_s5 + $0x10] sm:$0xff] %vm470_vm0, %v427_v19  ;;  %v431_v20 = vpop.permute.xlu0 %430 }
 0x249   :  { %475 = vst.msk [vmem:[%s1206_s5 + $0x20] sm:$0xff] %vm470_vm0, %v431_v20 }
 0x24b   :  { %v433_v21 = vpop.permute.xlu1 %432 }
 0x24c   :  { %476 = vst.msk [vmem:[%s1206_s5 + $0x28] sm:$0xff] %vm470_vm0, %v433_v21  ;;  %v435_v22 = vpop.permute.xlu0 %434 }
 0x24d   :  { %477 = vst.msk [vmem:[%s1206_s5 + $0x30] sm:$0xff] %vm470_vm0, %v435_v22 }
 0x24f   :  { %v437_v23 = vpop.permute.xlu1 %436 }
 0x250   :  { %478 = vst.msk [vmem:[%s1206_s5 + $0x38] sm:$0xff] %vm470_vm0, %v437_v23  ;;  %v439_v24 = vpop.permute.xlu0 %438 }
 0x251   :  { %479 = vst.msk [vmem:[%s1206_s5 + $0x40] sm:$0xff] %vm470_vm0, %v439_v24 }
 0x253   :  { %v441_v25 = vpop.permute.xlu1 %440 }
 0x254   :  { %480 = vst.msk [vmem:[%s1206_s5 + $0x48] sm:$0xff] %vm470_vm0, %v441_v25  ;;  %v443_v26 = vpop.permute.xlu0 %442 }
 0x255   :  { %481 = vst.msk [vmem:[%s1206_s5 + $0x50] sm:$0xff] %vm470_vm0, %v443_v26 }
 0x257   :  { %v445_v27 = vpop.permute.xlu1 %444 }
 0x258   :  { %482 = vst.msk [vmem:[%s1206_s5 + $0x58] sm:$0xff] %vm470_vm0, %v445_v27  ;;  %v447_v28 = vpop.permute.xlu0 %446 }
 0x259   :  { %483 = vst.msk [vmem:[%s1206_s5 + $0x60] sm:$0xff] %vm470_vm0, %v447_v28 }
 0x25b   :  { %v449_v29 = vpop.permute.xlu1 %448 }
 0x25c   :  { %484 = vst.msk [vmem:[%s1206_s5 + $0x68] sm:$0xff] %vm470_vm0, %v449_v29  ;;  %v451_v30 = vpop.permute.xlu0 %450 }
 0x25d   :  { %485 = vst.msk [vmem:[%s1206_s5 + $0x70] sm:$0xff] %vm470_vm0, %v451_v30 }
 0x25f   :  { %v453_v31 = vpop.permute.xlu1 %452 }
 0x260   :  { %486 = vst.msk [vmem:[%s1206_s5 + $0x78] sm:$0xff] %vm470_vm0, %v453_v31 }
 0x28c   :  { %v503_v32 = vpop.trf.xlu0 }
 0x28d   :  { %519 = vst [vmem:[#allocation4] sm:$0x1] %v503_v32 }
 0x28e   :  { %951 = shalt.err (!%p948_p12)
}
 0x28f   :  { %s952_s26 = scalar_lea.hbm %s1205_s4, 16 }
 0x290   :  { %p953_p13 = scmp.ne.s32.totalorder %s1205_s4, %s952_s26  ;;  %p956_p0 = scmp.lt.u32.totalorder %s952_s26, %s1205_s4 }
 0x292   :  { %p958_p1 = pnand %p956_p0, %p953_p13 }
 0x294   :  { %961 = shalt.err (!%p958_p1)
}
 0x295   :  { %621 = dma.vmem_to_hbm [thread:$0]  %s619_s21, 16, %s1205_s4, [#allocation5]  }
 0x296   :  { %962 = dma.done.wait [#allocation3], 1024  }
 0x297   :  { %963 = vsyncadd [#allocation3], 4294966272 }
 0x298   :  { %964 = dma.done.wait [#allocation5], 16  }
 0x299   :  { %965 = vsyncadd [#allocation5], 4294967280 }
 0x29a   :  { %632 = vsyncpa [#allocation3], 1 }
 0x29b   :  { %633 = vsyncpa [#allocation5], 1 }

</bundles_post_ra>
